<compile_context>
chip_gen: v7x
topology: tpu7x:2x2x1
jax: 0.10.0
libtpu: 0.0.40
codegen_flags: <defaults>
</compile_context>

<pallas_src>
import functools

import jax
import jax.numpy as jnp
from jax import lax
from jax.experimental import pallas as pl
from jax.experimental.pallas import tpu as pltpu


def _round_up(x, m):
    return (x + m - 1) // m * m


# -----------------------------------------------------------------------------
# Kernel: one image per grid step.
#   conv1x1 -> bn -> relu -> conv3x3(pad=1) -> bn -> relu -> conv1x1 -> bn
#   -> +identity -> relu
# -----------------------------------------------------------------------------
def bottleneck_kernel(x_ref, w1_ref, b1_ref, w2_ref, b2_ref, w3_ref, b3_ref,
                      o_ref, h1_slab, im2col, h2c,
                      *, H, W, Wp, margin, core_al, mm_dtype):
    """
    x_ref   : (Cin,  H*W)        input pixels, channel-major, lane-dense (f32)
    w1_ref  : (width, Cin)       conv1 weight, bn1 scale folded (mm_dtype)
    b1_ref  : (width, 1)         bn1 bias (f32)
    w2_ref  : (width, 9*width)   conv2 weight, im2col order, bn2 folded (mm_dtype)
    b2_ref  : (width, 1)         bn2 bias (f32)
    w3_ref  : (Cout, width)      conv3 weight, bn3 scale folded (mm_dtype)
    b3_ref  : (Cout, 1)          bn3 bias (f32)
    o_ref   : (Cout, H*W)        output pixels, lane-dense
    h1_slab : (width, p_slab)    f32 scratch: conv1 output on the padded-flat domain
    im2col  : (9*width, core_al) f32 scratch: conv2 im2col matrix (written in place)
    h2c     : (width, H*W)       f32 scratch: conv2 output compacted to interior pixels
    """
    def mm(a, b):  # MXU matmul, f32 accumulation; bf16 operands on v6e/v7x.
        return jnp.dot(a.astype(mm_dtype), b.astype(mm_dtype),
                       preferred_element_type=jnp.float32)

    x = x_ref[...]                                            # (Cin, H*W) f32

    # --- conv1 (1x1) + bn1 + relu on the unpadded pixel domain ---------------
    h1 = jnp.maximum(mm(w1_ref[...], x) + b1_ref[...], 0.0)   # (width, H*W) f32
    width = h1.shape[0]

    # --- scatter h1 into a zeroed padded-flat slab ----------------------------
    # Column margin + y'*Wp + x' holds padded coordinate (y', x'); columns we
    # never write stay 0, which IS conv2's zero padding (no mask needed).
    h1_slab[...] = jnp.zeros_like(h1_slab)
    for y in range(H):
        dst = margin + (y + 1) * Wp + 1
        h1_slab[:, dst:dst + W] = h1[:, y * W:(y + 1) * W]

    # --- conv2 (3x3, stride 1, pad 1) as ONE im2col matmul --------------------
    # Tap (ky, kx) is a static lane shift on the padded-flat domain, written
    # directly into the scratch (no concatenate). margin=128 keeps the centre
    # tap vreg-aligned; the other 8 taps are sub-128 shifts.
    for t in range(9):
        ky, kx = t // 3, t % 3
        s = margin + (ky - 1) * Wp + (kx - 1)
        im2col[t * width:(t + 1) * width, :] = h1_slab[:, s:s + core_al]
    h2 = mm(w2_ref[...], im2col[...])                          # (width, core_al)

    # --- compact conv2 output back to interior pixels, bn2 + relu -------------
    for y in range(H):
        src = (y + 1) * Wp + 1
        h2c[:, y * W:(y + 1) * W] = h2[:, src:src + W]
    h2i = jnp.maximum(h2c[...] + b2_ref[...], 0.0)             # (width, H*W)

    # --- conv3 (1x1) + bn3 + identity residual + relu, lane-dense store -------
    h3 = mm(w3_ref[...], h2i) + b3_ref[...]                    # (Cout, H*W)
    o_ref[...] = jnp.maximum(h3 + x, 0.0).astype(o_ref.dtype)


# -----------------------------------------------------------------------------
# Wrapper: NCHW in / NCHW out; the only wrapper ops are free reshapes.
# -----------------------------------------------------------------------------
def bottleneck_pallas(x_nchw, params, *, matmul_dtype=jnp.bfloat16):
    w1, b1, w2, b2, w3, b3 = params
    N, Cin, H, W = x_nchw.shape
    width = w1.shape[0]
    Cout = w3.shape[0]
    assert Cin == Cout, "identity residual requires inplanes == planes*expansion"

    Hp, Wp = H + 2, W + 2
    HW = H * W
    margin = 128                                   # vreg-aligned centre tap
    core_al = _round_up(Hp * Wp, 128)              # im2col / matmul-N width
    p_slab = _round_up(margin + Wp + 1 + core_al, 128)

    # Free, contiguous reshape: (N, Cin, H, W) -> (N*Cin, H*W). No transpose.
    x_flat = x_nchw.reshape(N * Cin, HW)

    kern = functools.partial(bottleneck_kernel, H=H, W=W, Wp=Wp, margin=margin,
                             core_al=core_al, mm_dtype=matmul_dtype)
    wcast = lambda w: w.astype(matmul_dtype)

    out_flat = pl.pallas_call(
        kern,
        out_shape=jax.ShapeDtypeStruct((N * Cout, HW), jnp.float32),
        grid=(N,),
        in_specs=[
            pl.BlockSpec((Cin, HW), lambda n: (n, 0)),     # per-image input
            pl.BlockSpec(w1.shape, lambda n: (0, 0)),      # weights: fetched once
            pl.BlockSpec(b1.shape, lambda n: (0, 0)),
            pl.BlockSpec(w2.shape, lambda n: (0, 0)),
            pl.BlockSpec(b2.shape, lambda n: (0, 0)),
            pl.BlockSpec(w3.shape, lambda n: (0, 0)),
            pl.BlockSpec(b3.shape, lambda n: (0, 0)),
        ],
        out_specs=pl.BlockSpec((Cout, HW), lambda n: (n, 0)),
        scratch_shapes=[
            pltpu.VMEM((width, p_slab), jnp.float32),       # padded-flat h1 slab
            pltpu.VMEM((9 * width, core_al), jnp.float32),  # im2col
            pltpu.VMEM((width, HW), jnp.float32),           # compacted h2
        ],
        compiler_params=pltpu.CompilerParams(
            dimension_semantics=("parallel",)),             # 2 TCs on v7x
    )(x_flat, wcast(w1), b1, wcast(w2), b2, wcast(w3), b3)

    # Free reshape back to NCHW.
    return out_flat.reshape(N, Cout, H, W)


# -----------------------------------------------------------------------------
# Parameter construction (mirrors the PyTorch module's shapes, BN folded)
# -----------------------------------------------------------------------------
def make_params(key, inplanes, planes, base_width=64, groups=1):
    expansion = 4
    width = int(planes * (base_width / 64.0)) * groups
    cout = planes * expansion
    eps = 1e-5
    ks = jax.random.split(key, 15)

    def bn_params(k0, k1, k2, k3, c):
        gamma = 0.5 + jax.random.uniform(k0, (c,), jnp.float32)
        beta = 0.1 * jax.random.normal(k1, (c,), jnp.float32)
        mean = 0.1 * jax.random.normal(k2, (c,), jnp.float32)
        var = 0.5 + jax.random.uniform(k3, (c,), jnp.float32)
        scale = gamma / jnp.sqrt(var + eps)
        bias = beta - mean * scale
        return scale, bias

    # conv weights in PyTorch OIHW convention
    w1_oihw = 0.1 * jax.random.normal(ks[0], (width, inplanes, 1, 1), jnp.float32)
    w2_oihw = 0.1 * jax.random.normal(ks[1], (width, width, 3, 3), jnp.float32)
    w3_oihw = 0.1 * jax.random.normal(ks[2], (cout, width, 1, 1), jnp.float32)

    s1, b1 = bn_params(ks[3], ks[4], ks[5], ks[6], width)
    s2, b2 = bn_params(ks[7], ks[8], ks[9], ks[10], width)
    s3, b3 = bn_params(ks[11], ks[12], ks[13], ks[14], cout)

    # Kernel layouts (out_channels x in_features), BN scale folded into weights.
    w1_k = w1_oihw[:, :, 0, 0] * s1[:, None]                           # (width, Cin)
    w2_k = jnp.transpose(w2_oihw, (0, 2, 3, 1)).reshape(width, 9 * width)
    w2_k = w2_k * s2[:, None]                                          # (width, 9*width)
    w3_k = w3_oihw[:, :, 0, 0] * s3[:, None]                           # (Cout, width)

    kernel_params = (w1_k, b1.reshape(-1, 1), w2_k, b2.reshape(-1, 1),
                     w3_k, b3.reshape(-1, 1))
    torch_params = (w1_oihw, s1, b1, w2_oihw, s2, b2, w3_oihw, s3, b3)
    return kernel_params, torch_params


# -----------------------------------------------------------------------------
# Pure-JAX reference (matches the PyTorch forward with eval-mode BatchNorm)
# -----------------------------------------------------------------------------
def bottleneck_reference(x, torch_params):
    w1, s1, b1, w2, s2, b2, w3, s3, b3 = torch_params

    def conv(x, w, pad=0):
        return lax.conv_general_dilated(
            x, w, window_strides=(1, 1), padding=[(pad, pad), (pad, pad)],
            dimension_numbers=('NCHW', 'OIHW', 'NCHW'))

    def bn(x, scale, bias):
        return x * scale[None, :, None, None] + bias[None, :, None, None]

    out = jax.nn.relu(bn(conv(x, w1), s1, b1))
    out = jax.nn.relu(bn(conv(out, w2, pad=1), s2, b2))
    out = bn(conv(out, w3), s3, b3)
    return jax.nn.relu(out + x)   # downsample is None -> identity = x


if __name__ == "__main__":
    # inplanes == planes * expansion so that downsample is None and the
    # residual is the raw input (matches the PyTorch module defaults).
    N, inplanes, planes, H, W = 2, 32, 8, 16, 16

    key = jax.random.PRNGKey(0)
    kx_, kp = jax.random.split(key)
    x = jax.random.normal(kx_, (N, inplanes, H, W), jnp.float32)  # NCHW input

    kernel_params, torch_params = make_params(kp, inplanes, planes)
    y_ref = jax.block_until_ready(bottleneck_reference(x, torch_params))

    # f32 MXU operands: numerically faithful path, tight tolerance.
    y_f32 = jax.block_until_ready(
        bottleneck_pallas(x, kernel_params, matmul_dtype=jnp.float32))
    assert y_f32.shape == (N, planes * 4, H, W), y_f32.shape
    err_f32 = float(jnp.max(jnp.abs(y_f32 - y_ref)))
    assert err_f32 < 1e-3, f"f32 max abs error {err_f32}"

    # bf16 MXU operands (perf path on v6e/v7x): f32 accumulation, so only
    # operand-rounding error (~1e-2 at these magnitudes) is expected.
    y_bf16 = jax.block_until_ready(
        bottleneck_pallas(x, kernel_params, matmul_dtype=jnp.bfloat16))
    err_bf16 = float(jnp.max(jnp.abs(y_bf16 - y_ref)))
    assert err_bf16 < 2e-1, f"bf16 max abs error {err_bf16}"

    print("KERNEL_OK")
</pallas_src>

<mosaic_0001>
module attributes {stable_mosaic.version = 11 : i64} {
  func.func @bottleneck_kernel(%arg0: i32, %arg1: memref<32x256xf32, #tpu.memory_space<vmem>>, %arg2: memref<8x32xf32, #tpu.memory_space<vmem>>, %arg3: memref<8x1xf32, #tpu.memory_space<vmem>>, %arg4: memref<8x72xf32, #tpu.memory_space<vmem>>, %arg5: memref<8x1xf32, #tpu.memory_space<vmem>>, %arg6: memref<32x8xf32, #tpu.memory_space<vmem>>, %arg7: memref<32x1xf32, #tpu.memory_space<vmem>>, %arg8: memref<32x256xf32, #tpu.memory_space<vmem>>, %arg9: memref<8x640xf32, #tpu.memory_space<vmem>>, %arg10: memref<72x384xf32, #tpu.memory_space<vmem>>, %arg11: memref<8x256xf32, #tpu.memory_space<vmem>>) attributes {dimension_semantics = [#tpu.dimension_semantics<parallel>], iteration_bounds = array<i64: 2>, scalar_prefetch = 0 : i64, scratch_operands = 3 : i64, tpu.core_type = #tpu.core_type<tc>, window_params = [{transform_indices = @transform_0, window_bounds = array<i64: 32, 256>}, {pipeline_mode = #tpu.pipeline_mode<synchronous>, transform_indices = @transform_1, window_bounds = array<i64: 8, 32>}, {pipeline_mode = #tpu.pipeline_mode<synchronous>, transform_indices = @transform_2, window_bounds = array<i64: 8, 1>}, {pipeline_mode = #tpu.pipeline_mode<synchronous>, transform_indices = @transform_3, window_bounds = array<i64: 8, 72>}, {pipeline_mode = #tpu.pipeline_mode<synchronous>, transform_indices = @transform_4, window_bounds = array<i64: 8, 1>}, {pipeline_mode = #tpu.pipeline_mode<synchronous>, transform_indices = @transform_5, window_bounds = array<i64: 32, 8>}, {pipeline_mode = #tpu.pipeline_mode<synchronous>, transform_indices = @transform_6, window_bounds = array<i64: 32, 1>}, {transform_indices = @transform_7, window_bounds = array<i64: 32, 256>}]} {
    %c0 = arith.constant 0 : index
    %c0_0 = arith.constant 0 : index
    %0 = vector.load %arg1[%c0, %c0_0] : memref<32x256xf32, #tpu.memory_space<vmem>>, vector<32x256xf32>
    %c0_1 = arith.constant 0 : index
    %c0_2 = arith.constant 0 : index
    %1 = vector.load %arg2[%c0_1, %c0_2] : memref<8x32xf32, #tpu.memory_space<vmem>>, vector<8x32xf32>
    %cst = arith.constant dense<0.000000e+00> : vector<8x256xf32>
    %2 = tpu.matmul %1, %0, %cst {dimension_numbers = #tpu.dot_dimension_numbers<[1], [0], [0], [1], [0, 0, 1, 1], [], []>} : vector<8x32xf32>, vector<32x256xf32>, vector<8x256xf32> -> vector<8x256xf32>
    %c0_3 = arith.constant 0 : index
    %c0_4 = arith.constant 0 : index
    %3 = vector.load %arg3[%c0_3, %c0_4] : memref<8x1xf32, #tpu.memory_space<vmem>>, vector<8x1xf32>
    %4 = vector.broadcast %3 : vector<8x1xf32> to vector<8x256xf32>
    %5 = arith.addf %2, %4 : vector<8x256xf32>
    %cst_5 = arith.constant 0.000000e+00 : f32
    %6 = vector.broadcast %cst_5 : f32 to vector<8x256xf32>
    %7 = arith.maximumf %5, %6 : vector<8x256xf32>
    %cst_6 = arith.constant 0.000000e+00 : f32
    %8 = vector.broadcast %cst_6 : f32 to vector<8x640xf32>
    %c0_7 = arith.constant 0 : index
    %c0_8 = arith.constant 0 : index
    %9 = vector.load %arg9[%c0_7, %c0_8] : memref<8x640xf32, #tpu.memory_space<vmem>>, vector<8x640xf32>
    tpu.vector_store %arg9[%c0_7, %c0_8], %8 {strides = array<i32>} : memref<8x640xf32, #tpu.memory_space<vmem>>, vector<8x640xf32>,
    %10 = vector.extract_strided_slice %7 {offsets = [0, 0], sizes = [8, 16], strides = [1, 1]} : vector<8x256xf32> to vector<8x16xf32>
    %c0_9 = arith.constant 0 : index
    %c147 = arith.constant 147 : index
    %11 = vector.load %arg9[%c0_9, %c147] : memref<8x640xf32, #tpu.memory_space<vmem>>, vector<8x16xf32>
    tpu.vector_store %arg9[%c0_9, %c147], %10 {strides = array<i32>} : memref<8x640xf32, #tpu.memory_space<vmem>>, vector<8x16xf32>,
    %12 = vector.extract_strided_slice %7 {offsets = [0, 16], sizes = [8, 16], strides = [1, 1]} : vector<8x256xf32> to vector<8x16xf32>
    %c0_10 = arith.constant 0 : index
    %c165 = arith.constant 165 : index
    %13 = vector.load %arg9[%c0_10, %c165] : memref<8x640xf32, #tpu.memory_space<vmem>>, vector<8x16xf32>
    tpu.vector_store %arg9[%c0_10, %c165], %12 {strides = array<i32>} : memref<8x640xf32, #tpu.memory_space<vmem>>, vector<8x16xf32>,
    %14 = vector.extract_strided_slice %7 {offsets = [0, 32], sizes = [8, 16], strides = [1, 1]} : vector<8x256xf32> to vector<8x16xf32>
    %c0_11 = arith.constant 0 : index
    %c183 = arith.constant 183 : index
    %15 = vector.load %arg9[%c0_11, %c183] : memref<8x640xf32, #tpu.memory_space<vmem>>, vector<8x16xf32>
    tpu.vector_store %arg9[%c0_11, %c183], %14 {strides = array<i32>} : memref<8x640xf32, #tpu.memory_space<vmem>>, vector<8x16xf32>,
    %16 = vector.extract_strided_slice %7 {offsets = [0, 48], sizes = [8, 16], strides = [1, 1]} : vector<8x256xf32> to vector<8x16xf32>
    %c0_12 = arith.constant 0 : index
    %c201 = arith.constant 201 : index
    %17 = vector.load %arg9[%c0_12, %c201] : memref<8x640xf32, #tpu.memory_space<vmem>>, vector<8x16xf32>
    tpu.vector_store %arg9[%c0_12, %c201], %16 {strides = array<i32>} : memref<8x640xf32, #tpu.memory_space<vmem>>, vector<8x16xf32>,
    %18 = vector.extract_strided_slice %7 {offsets = [0, 64], sizes = [8, 16], strides = [1, 1]} : vector<8x256xf32> to vector<8x16xf32>
    %c0_13 = arith.constant 0 : index
    %c219 = arith.constant 219 : index
    %19 = vector.load %arg9[%c0_13, %c219] : memref<8x640xf32, #tpu.memory_space<vmem>>, vector<8x16xf32>
    tpu.vector_store %arg9[%c0_13, %c219], %18 {strides = array<i32>} : memref<8x640xf32, #tpu.memory_space<vmem>>, vector<8x16xf32>,
    %20 = vector.extract_strided_slice %7 {offsets = [0, 80], sizes = [8, 16], strides = [1, 1]} : vector<8x256xf32> to vector<8x16xf32>
    %c0_14 = arith.constant 0 : index
    %c237 = arith.constant 237 : index
    %21 = vector.load %arg9[%c0_14, %c237] : memref<8x640xf32, #tpu.memory_space<vmem>>, vector<8x16xf32>
    tpu.vector_store %arg9[%c0_14, %c237], %20 {strides = array<i32>} : memref<8x640xf32, #tpu.memory_space<vmem>>, vector<8x16xf32>,
    %22 = vector.extract_strided_slice %7 {offsets = [0, 96], sizes = [8, 16], strides = [1, 1]} : vector<8x256xf32> to vector<8x16xf32>
    %c0_15 = arith.constant 0 : index
    %c255 = arith.constant 255 : index
    %23 = vector.load %arg9[%c0_15, %c255] : memref<8x640xf32, #tpu.memory_space<vmem>>, vector<8x16xf32>
    tpu.vector_store %arg9[%c0_15, %c255], %22 {strides = array<i32>} : memref<8x640xf32, #tpu.memory_space<vmem>>, vector<8x16xf32>,
    %24 = vector.extract_strided_slice %7 {offsets = [0, 112], sizes = [8, 16], strides = [1, 1]} : vector<8x256xf32> to vector<8x16xf32>
    %c0_16 = arith.constant 0 : index
    %c273 = arith.constant 273 : index
    %25 = vector.load %arg9[%c0_16, %c273] : memref<8x640xf32, #tpu.memory_space<vmem>>, vector<8x16xf32>
    tpu.vector_store %arg9[%c0_16, %c273], %24 {strides = array<i32>} : memref<8x640xf32, #tpu.memory_space<vmem>>, vector<8x16xf32>,
    %26 = vector.extract_strided_slice %7 {offsets = [0, 128], sizes = [8, 16], strides = [1, 1]} : vector<8x256xf32> to vector<8x16xf32>
    %c0_17 = arith.constant 0 : index
    %c291 = arith.constant 291 : index
    %27 = vector.load %arg9[%c0_17, %c291] : memref<8x640xf32, #tpu.memory_space<vmem>>, vector<8x16xf32>
    tpu.vector_store %arg9[%c0_17, %c291], %26 {strides = array<i32>} : memref<8x640xf32, #tpu.memory_space<vmem>>, vector<8x16xf32>,
    %28 = vector.extract_strided_slice %7 {offsets = [0, 144], sizes = [8, 16], strides = [1, 1]} : vector<8x256xf32> to vector<8x16xf32>
    %c0_18 = arith.constant 0 : index
    %c309 = arith.constant 309 : index
    %29 = vector.load %arg9[%c0_18, %c309] : memref<8x640xf32, #tpu.memory_space<vmem>>, vector<8x16xf32>
    tpu.vector_store %arg9[%c0_18, %c309], %28 {strides = array<i32>} : memref<8x640xf32, #tpu.memory_space<vmem>>, vector<8x16xf32>,
    %30 = vector.extract_strided_slice %7 {offsets = [0, 160], sizes = [8, 16], strides = [1, 1]} : vector<8x256xf32> to vector<8x16xf32>
    %c0_19 = arith.constant 0 : index
    %c327 = arith.constant 327 : index
    %31 = vector.load %arg9[%c0_19, %c327] : memref<8x640xf32, #tpu.memory_space<vmem>>, vector<8x16xf32>
    tpu.vector_store %arg9[%c0_19, %c327], %30 {strides = array<i32>} : memref<8x640xf32, #tpu.memory_space<vmem>>, vector<8x16xf32>,
    %32 = vector.extract_strided_slice %7 {offsets = [0, 176], sizes = [8, 16], strides = [1, 1]} : vector<8x256xf32> to vector<8x16xf32>
    %c0_20 = arith.constant 0 : index
    %c345 = arith.constant 345 : index
    %33 = vector.load %arg9[%c0_20, %c345] : memref<8x640xf32, #tpu.memory_space<vmem>>, vector<8x16xf32>
    tpu.vector_store %arg9[%c0_20, %c345], %32 {strides = array<i32>} : memref<8x640xf32, #tpu.memory_space<vmem>>, vector<8x16xf32>,
    %34 = vector.extract_strided_slice %7 {offsets = [0, 192], sizes = [8, 16], strides = [1, 1]} : vector<8x256xf32> to vector<8x16xf32>
    %c0_21 = arith.constant 0 : index
    %c363 = arith.constant 363 : index
    %35 = vector.load %arg9[%c0_21, %c363] : memref<8x640xf32, #tpu.memory_space<vmem>>, vector<8x16xf32>
    tpu.vector_store %arg9[%c0_21, %c363], %34 {strides = array<i32>} : memref<8x640xf32, #tpu.memory_space<vmem>>, vector<8x16xf32>,
    %36 = vector.extract_strided_slice %7 {offsets = [0, 208], sizes = [8, 16], strides = [1, 1]} : vector<8x256xf32> to vector<8x16xf32>
    %c0_22 = arith.constant 0 : index
    %c381 = arith.constant 381 : index
    %37 = vector.load %arg9[%c0_22, %c381] : memref<8x640xf32, #tpu.memory_space<vmem>>, vector<8x16xf32>
    tpu.vector_store %arg9[%c0_22, %c381], %36 {strides = array<i32>} : memref<8x640xf32, #tpu.memory_space<vmem>>, vector<8x16xf32>,
    %38 = vector.extract_strided_slice %7 {offsets = [0, 224], sizes = [8, 16], strides = [1, 1]} : vector<8x256xf32> to vector<8x16xf32>
    %c0_23 = arith.constant 0 : index
    %c399 = arith.constant 399 : index
    %39 = vector.load %arg9[%c0_23, %c399] : memref<8x640xf32, #tpu.memory_space<vmem>>, vector<8x16xf32>
    tpu.vector_store %arg9[%c0_23, %c399], %38 {strides = array<i32>} : memref<8x640xf32, #tpu.memory_space<vmem>>, vector<8x16xf32>,
    %40 = vector.extract_strided_slice %7 {offsets = [0, 240], sizes = [8, 16], strides = [1, 1]} : vector<8x256xf32> to vector<8x16xf32>
    %c0_24 = arith.constant 0 : index
    %c417 = arith.constant 417 : index
    %41 = vector.load %arg9[%c0_24, %c417] : memref<8x640xf32, #tpu.memory_space<vmem>>, vector<8x16xf32>
    tpu.vector_store %arg9[%c0_24, %c417], %40 {strides = array<i32>} : memref<8x640xf32, #tpu.memory_space<vmem>>, vector<8x16xf32>,
    %c0_25 = arith.constant 0 : index
    %c109 = arith.constant 109 : index
    %42 = vector.load %arg9[%c0_25, %c109] : memref<8x640xf32, #tpu.memory_space<vmem>>, vector<8x384xf32>
    %c0_26 = arith.constant 0 : index
    %c0_27 = arith.constant 0 : index
    %43 = vector.load %arg10[%c0_26, %c0_27] : memref<72x384xf32, #tpu.memory_space<vmem>>, vector<8x384xf32>
    tpu.vector_store %arg10[%c0_26, %c0_27], %42 {strides = array<i32>} : memref<72x384xf32, #tpu.memory_space<vmem>>, vector<8x384xf32>,
    %c0_28 = arith.constant 0 : index
    %c110 = arith.constant 110 : index
    %44 = vector.load %arg9[%c0_28, %c110] : memref<8x640xf32, #tpu.memory_space<vmem>>, vector<8x384xf32>
    %c8 = arith.constant 8 : index
    %c0_29 = arith.constant 0 : index
    %45 = vector.load %arg10[%c8, %c0_29] : memref<72x384xf32, #tpu.memory_space<vmem>>, vector<8x384xf32>
    tpu.vector_store %arg10[%c8, %c0_29], %44 {strides = array<i32>} : memref<72x384xf32, #tpu.memory_space<vmem>>, vector<8x384xf32>,
    %c0_30 = arith.constant 0 : index
    %c111 = arith.constant 111 : index
    %46 = vector.load %arg9[%c0_30, %c111] : memref<8x640xf32, #tpu.memory_space<vmem>>, vector<8x384xf32>
    %c16 = arith.constant 16 : index
    %c0_31 = arith.constant 0 : index
    %47 = vector.load %arg10[%c16, %c0_31] : memref<72x384xf32, #tpu.memory_space<vmem>>, vector<8x384xf32>
    tpu.vector_store %arg10[%c16, %c0_31], %46 {strides = array<i32>} : memref<72x384xf32, #tpu.memory_space<vmem>>, vector<8x384xf32>,
    %c0_32 = arith.constant 0 : index
    %c127 = arith.constant 127 : index
    %48 = vector.load %arg9[%c0_32, %c127] : memref<8x640xf32, #tpu.memory_space<vmem>>, vector<8x384xf32>
    %c24 = arith.constant 24 : index
    %c0_33 = arith.constant 0 : index
    %49 = vector.load %arg10[%c24, %c0_33] : memref<72x384xf32, #tpu.memory_space<vmem>>, vector<8x384xf32>
    tpu.vector_store %arg10[%c24, %c0_33], %48 {strides = array<i32>} : memref<72x384xf32, #tpu.memory_space<vmem>>, vector<8x384xf32>,
    %c0_34 = arith.constant 0 : index
    %c128 = arith.constant 128 : index
    %50 = vector.load %arg9[%c0_34, %c128] : memref<8x640xf32, #tpu.memory_space<vmem>>, vector<8x384xf32>
    %c32 = arith.constant 32 : index
    %c0_35 = arith.constant 0 : index
    %51 = vector.load %arg10[%c32, %c0_35] : memref<72x384xf32, #tpu.memory_space<vmem>>, vector<8x384xf32>
    tpu.vector_store %arg10[%c32, %c0_35], %50 {strides = array<i32>} : memref<72x384xf32, #tpu.memory_space<vmem>>, vector<8x384xf32>,
    %c0_36 = arith.constant 0 : index
    %c129 = arith.constant 129 : index
    %52 = vector.load %arg9[%c0_36, %c129] : memref<8x640xf32, #tpu.memory_space<vmem>>, vector<8x384xf32>
    %c40 = arith.constant 40 : index
    %c0_37 = arith.constant 0 : index
    %53 = vector.load %arg10[%c40, %c0_37] : memref<72x384xf32, #tpu.memory_space<vmem>>, vector<8x384xf32>
    tpu.vector_store %arg10[%c40, %c0_37], %52 {strides = array<i32>} : memref<72x384xf32, #tpu.memory_space<vmem>>, vector<8x384xf32>,
    %c0_38 = arith.constant 0 : index
    %c145 = arith.constant 145 : index
    %54 = vector.load %arg9[%c0_38, %c145] : memref<8x640xf32, #tpu.memory_space<vmem>>, vector<8x384xf32>
    %c48 = arith.constant 48 : index
    %c0_39 = arith.constant 0 : index
    %55 = vector.load %arg10[%c48, %c0_39] : memref<72x384xf32, #tpu.memory_space<vmem>>, vector<8x384xf32>
    tpu.vector_store %arg10[%c48, %c0_39], %54 {strides = array<i32>} : memref<72x384xf32, #tpu.memory_space<vmem>>, vector<8x384xf32>,
    %c0_40 = arith.constant 0 : index
    %c146 = arith.constant 146 : index
    %56 = vector.load %arg9[%c0_40, %c146] : memref<8x640xf32, #tpu.memory_space<vmem>>, vector<8x384xf32>
    %c56 = arith.constant 56 : index
    %c0_41 = arith.constant 0 : index
    %57 = vector.load %arg10[%c56, %c0_41] : memref<72x384xf32, #tpu.memory_space<vmem>>, vector<8x384xf32>
    tpu.vector_store %arg10[%c56, %c0_41], %56 {strides = array<i32>} : memref<72x384xf32, #tpu.memory_space<vmem>>, vector<8x384xf32>,
    %c0_42 = arith.constant 0 : index
    %c147_43 = arith.constant 147 : index
    %58 = vector.load %arg9[%c0_42, %c147_43] : memref<8x640xf32, #tpu.memory_space<vmem>>, vector<8x384xf32>
    %c64 = arith.constant 64 : index
    %c0_44 = arith.constant 0 : index
    %59 = vector.load %arg10[%c64, %c0_44] : memref<72x384xf32, #tpu.memory_space<vmem>>, vector<8x384xf32>
    tpu.vector_store %arg10[%c64, %c0_44], %58 {strides = array<i32>} : memref<72x384xf32, #tpu.memory_space<vmem>>, vector<8x384xf32>,
    %c0_45 = arith.constant 0 : index
    %c0_46 = arith.constant 0 : index
    %60 = vector.load %arg4[%c0_45, %c0_46] : memref<8x72xf32, #tpu.memory_space<vmem>>, vector<8x72xf32>
    %c0_47 = arith.constant 0 : index
    %c0_48 = arith.constant 0 : index
    %61 = vector.load %arg10[%c0_47, %c0_48] : memref<72x384xf32, #tpu.memory_space<vmem>>, vector<72x384xf32>
    %cst_49 = arith.constant dense<0.000000e+00> : vector<8x384xf32>
    %62 = tpu.matmul %60, %61, %cst_49 {dimension_numbers = #tpu.dot_dimension_numbers<[1], [0], [0], [1], [0, 0, 1, 1], [], []>} : vector<8x72xf32>, vector<72x384xf32>, vector<8x384xf32> -> vector<8x384xf32>
    %63 = vector.extract_strided_slice %62 {offsets = [0, 19], sizes = [8, 16], strides = [1, 1]} : vector<8x384xf32> to vector<8x16xf32>
    %c0_50 = arith.constant 0 : index
    %c0_51 = arith.constant 0 : index
    %64 = vector.load %arg11[%c0_50, %c0_51] : memref<8x256xf32, #tpu.memory_space<vmem>>, vector<8x16xf32>
    tpu.vector_store %arg11[%c0_50, %c0_51], %63 {strides = array<i32>} : memref<8x256xf32, #tpu.memory_space<vmem>>, vector<8x16xf32>,
    %65 = vector.extract_strided_slice %62 {offsets = [0, 37], sizes = [8, 16], strides = [1, 1]} : vector<8x384xf32> to vector<8x16xf32>
    %c0_52 = arith.constant 0 : index
    %c16_53 = arith.constant 16 : index
    %66 = vector.load %arg11[%c0_52, %c16_53] : memref<8x256xf32, #tpu.memory_space<vmem>>, vector<8x16xf32>
    tpu.vector_store %arg11[%c0_52, %c16_53], %65 {strides = array<i32>} : memref<8x256xf32, #tpu.memory_space<vmem>>, vector<8x16xf32>,
    %67 = vector.extract_strided_slice %62 {offsets = [0, 55], sizes = [8, 16], strides = [1, 1]} : vector<8x384xf32> to vector<8x16xf32>
    %c0_54 = arith.constant 0 : index
    %c32_55 = arith.constant 32 : index
    %68 = vector.load %arg11[%c0_54, %c32_55] : memref<8x256xf32, #tpu.memory_space<vmem>>, vector<8x16xf32>
    tpu.vector_store %arg11[%c0_54, %c32_55], %67 {strides = array<i32>} : memref<8x256xf32, #tpu.memory_space<vmem>>, vector<8x16xf32>,
    %69 = vector.extract_strided_slice %62 {offsets = [0, 73], sizes = [8, 16], strides = [1, 1]} : vector<8x384xf32> to vector<8x16xf32>
    %c0_56 = arith.constant 0 : index
    %c48_57 = arith.constant 48 : index
    %70 = vector.load %arg11[%c0_56, %c48_57] : memref<8x256xf32, #tpu.memory_space<vmem>>, vector<8x16xf32>
    tpu.vector_store %arg11[%c0_56, %c48_57], %69 {strides = array<i32>} : memref<8x256xf32, #tpu.memory_space<vmem>>, vector<8x16xf32>,
    %71 = vector.extract_strided_slice %62 {offsets = [0, 91], sizes = [8, 16], strides = [1, 1]} : vector<8x384xf32> to vector<8x16xf32>
    %c0_58 = arith.constant 0 : index
    %c64_59 = arith.constant 64 : index
    %72 = vector.load %arg11[%c0_58, %c64_59] : memref<8x256xf32, #tpu.memory_space<vmem>>, vector<8x16xf32>
    tpu.vector_store %arg11[%c0_58, %c64_59], %71 {strides = array<i32>} : memref<8x256xf32, #tpu.memory_space<vmem>>, vector<8x16xf32>,
    %73 = vector.extract_strided_slice %62 {offsets = [0, 109], sizes = [8, 16], strides = [1, 1]} : vector<8x384xf32> to vector<8x16xf32>
    %c0_60 = arith.constant 0 : index
    %c80 = arith.constant 80 : index
    %74 = vector.load %arg11[%c0_60, %c80] : memref<8x256xf32, #tpu.memory_space<vmem>>, vector<8x16xf32>
    tpu.vector_store %arg11[%c0_60, %c80], %73 {strides = array<i32>} : memref<8x256xf32, #tpu.memory_space<vmem>>, vector<8x16xf32>,
    %75 = vector.extract_strided_slice %62 {offsets = [0, 127], sizes = [8, 16], strides = [1, 1]} : vector<8x384xf32> to vector<8x16xf32>
    %c0_61 = arith.constant 0 : index
    %c96 = arith.constant 96 : index
    %76 = vector.load %arg11[%c0_61, %c96] : memref<8x256xf32, #tpu.memory_space<vmem>>, vector<8x16xf32>
    tpu.vector_store %arg11[%c0_61, %c96], %75 {strides = array<i32>} : memref<8x256xf32, #tpu.memory_space<vmem>>, vector<8x16xf32>,
    %77 = vector.extract_strided_slice %62 {offsets = [0, 145], sizes = [8, 16], strides = [1, 1]} : vector<8x384xf32> to vector<8x16xf32>
    %c0_62 = arith.constant 0 : index
    %c112 = arith.constant 112 : index
    %78 = vector.load %arg11[%c0_62, %c112] : memref<8x256xf32, #tpu.memory_space<vmem>>, vector<8x16xf32>
    tpu.vector_store %arg11[%c0_62, %c112], %77 {strides = array<i32>} : memref<8x256xf32, #tpu.memory_space<vmem>>, vector<8x16xf32>,
    %79 = vector.extract_strided_slice %62 {offsets = [0, 163], sizes = [8, 16], strides = [1, 1]} : vector<8x384xf32> to vector<8x16xf32>
    %c0_63 = arith.constant 0 : index
    %c128_64 = arith.constant 128 : index
    %80 = vector.load %arg11[%c0_63, %c128_64] : memref<8x256xf32, #tpu.memory_space<vmem>>, vector<8x16xf32>
    tpu.vector_store %arg11[%c0_63, %c128_64], %79 {strides = array<i32>} : memref<8x256xf32, #tpu.memory_space<vmem>>, vector<8x16xf32>,
    %81 = vector.extract_strided_slice %62 {offsets = [0, 181], sizes = [8, 16], strides = [1, 1]} : vector<8x384xf32> to vector<8x16xf32>
    %c0_65 = arith.constant 0 : index
    %c144 = arith.constant 144 : index
    %82 = vector.load %arg11[%c0_65, %c144] : memref<8x256xf32, #tpu.memory_space<vmem>>, vector<8x16xf32>
    tpu.vector_store %arg11[%c0_65, %c144], %81 {strides = array<i32>} : memref<8x256xf32, #tpu.memory_space<vmem>>, vector<8x16xf32>,
    %83 = vector.extract_strided_slice %62 {offsets = [0, 199], sizes = [8, 16], strides = [1, 1]} : vector<8x384xf32> to vector<8x16xf32>
    %c0_66 = arith.constant 0 : index
    %c160 = arith.constant 160 : index
    %84 = vector.load %arg11[%c0_66, %c160] : memref<8x256xf32, #tpu.memory_space<vmem>>, vector<8x16xf32>
    tpu.vector_store %arg11[%c0_66, %c160], %83 {strides = array<i32>} : memref<8x256xf32, #tpu.memory_space<vmem>>, vector<8x16xf32>,
    %85 = vector.extract_strided_slice %62 {offsets = [0, 217], sizes = [8, 16], strides = [1, 1]} : vector<8x384xf32> to vector<8x16xf32>
    %c0_67 = arith.constant 0 : index
    %c176 = arith.constant 176 : index
    %86 = vector.load %arg11[%c0_67, %c176] : memref<8x256xf32, #tpu.memory_space<vmem>>, vector<8x16xf32>
    tpu.vector_store %arg11[%c0_67, %c176], %85 {strides = array<i32>} : memref<8x256xf32, #tpu.memory_space<vmem>>, vector<8x16xf32>,
    %87 = vector.extract_strided_slice %62 {offsets = [0, 235], sizes = [8, 16], strides = [1, 1]} : vector<8x384xf32> to vector<8x16xf32>
    %c0_68 = arith.constant 0 : index
    %c192 = arith.constant 192 : index
    %88 = vector.load %arg11[%c0_68, %c192] : memref<8x256xf32, #tpu.memory_space<vmem>>, vector<8x16xf32>
    tpu.vector_store %arg11[%c0_68, %c192], %87 {strides = array<i32>} : memref<8x256xf32, #tpu.memory_space<vmem>>, vector<8x16xf32>,
    %89 = vector.extract_strided_slice %62 {offsets = [0, 253], sizes = [8, 16], strides = [1, 1]} : vector<8x384xf32> to vector<8x16xf32>
    %c0_69 = arith.constant 0 : index
    %c208 = arith.constant 208 : index
    %90 = vector.load %arg11[%c0_69, %c208] : memref<8x256xf32, #tpu.memory_space<vmem>>, vector<8x16xf32>
    tpu.vector_store %arg11[%c0_69, %c208], %89 {strides = array<i32>} : memref<8x256xf32, #tpu.memory_space<vmem>>, vector<8x16xf32>,
    %91 = vector.extract_strided_slice %62 {offsets = [0, 271], sizes = [8, 16], strides = [1, 1]} : vector<8x384xf32> to vector<8x16xf32>
    %c0_70 = arith.constant 0 : index
    %c224 = arith.constant 224 : index
    %92 = vector.load %arg11[%c0_70, %c224] : memref<8x256xf32, #tpu.memory_space<vmem>>, vector<8x16xf32>
    tpu.vector_store %arg11[%c0_70, %c224], %91 {strides = array<i32>} : memref<8x256xf32, #tpu.memory_space<vmem>>, vector<8x16xf32>,
    %93 = vector.extract_strided_slice %62 {offsets = [0, 289], sizes = [8, 16], strides = [1, 1]} : vector<8x384xf32> to vector<8x16xf32>
    %c0_71 = arith.constant 0 : index
    %c240 = arith.constant 240 : index
    %94 = vector.load %arg11[%c0_71, %c240] : memref<8x256xf32, #tpu.memory_space<vmem>>, vector<8x16xf32>
    tpu.vector_store %arg11[%c0_71, %c240], %93 {strides = array<i32>} : memref<8x256xf32, #tpu.memory_space<vmem>>, vector<8x16xf32>,
    %c0_72 = arith.constant 0 : index
    %c0_73 = arith.constant 0 : index
    %95 = vector.load %arg11[%c0_72, %c0_73] : memref<8x256xf32, #tpu.memory_space<vmem>>, vector<8x256xf32>
    %c0_74 = arith.constant 0 : index
    %c0_75 = arith.constant 0 : index
    %96 = vector.load %arg5[%c0_74, %c0_75] : memref<8x1xf32, #tpu.memory_space<vmem>>, vector<8x1xf32>
    %97 = vector.broadcast %96 : vector<8x1xf32> to vector<8x256xf32>
    %98 = arith.addf %95, %97 : vector<8x256xf32>
    %cst_76 = arith.constant 0.000000e+00 : f32
    %99 = vector.broadcast %cst_76 : f32 to vector<8x256xf32>
    %100 = arith.maximumf %98, %99 : vector<8x256xf32>
    %c0_77 = arith.constant 0 : index
    %c0_78 = arith.constant 0 : index
    %101 = vector.load %arg6[%c0_77, %c0_78] : memref<32x8xf32, #tpu.memory_space<vmem>>, vector<32x8xf32>
    %cst_79 = arith.constant dense<0.000000e+00> : vector<32x256xf32>
    %102 = tpu.matmul %101, %100, %cst_79 {dimension_numbers = #tpu.dot_dimension_numbers<[1], [0], [0], [1], [0, 0, 1, 1], [], []>} : vector<32x8xf32>, vector<8x256xf32>, vector<32x256xf32> -> vector<32x256xf32>
    %c0_80 = arith.constant 0 : index
    %c0_81 = arith.constant 0 : index
    %103 = vector.load %arg7[%c0_80, %c0_81] : memref<32x1xf32, #tpu.memory_space<vmem>>, vector<32x1xf32>
    %104 = vector.broadcast %103 : vector<32x1xf32> to vector<32x256xf32>
    %105 = arith.addf %102, %104 : vector<32x256xf32>
    %106 = arith.addf %105, %0 : vector<32x256xf32>
    %cst_82 = arith.constant 0.000000e+00 : f32
    %107 = vector.broadcast %cst_82 : f32 to vector<32x256xf32>
    %108 = arith.maximumf %106, %107 : vector<32x256xf32>
    %c0_83 = arith.constant 0 : index
    %c0_84 = arith.constant 0 : index
    %109 = vector.load %arg8[%c0_83, %c0_84] : memref<32x256xf32, #tpu.memory_space<vmem>>, vector<32x256xf32>
    tpu.vector_store %arg8[%c0_83, %c0_84], %108 {strides = array<i32>} : memref<32x256xf32, #tpu.memory_space<vmem>>, vector<32x256xf32>,
    return
  }
  func.func @transform_0(%arg0: i32) -> (i32, i32) {
    %c0_i32 = arith.constant 0 : i32
    %c0_i32_0 = arith.constant 0 : i32
    return %arg0, %c0_i32 : i32, i32
  }
  func.func @transform_1(%arg0: i32) -> (i32, i32) {
    %c0_i32 = arith.constant 0 : i32
    %c0_i32_0 = arith.constant 0 : i32
    %c0_i32_1 = arith.constant 0 : i32
    return %c0_i32, %c0_i32_0 : i32, i32
  }
  func.func @transform_2(%arg0: i32) -> (i32, i32) {
    %c0_i32 = arith.constant 0 : i32
    %c0_i32_0 = arith.constant 0 : i32
    %c0_i32_1 = arith.constant 0 : i32
    return %c0_i32, %c0_i32_0 : i32, i32
  }
  func.func @transform_3(%arg0: i32) -> (i32, i32) {
    %c0_i32 = arith.constant 0 : i32
    %c0_i32_0 = arith.constant 0 : i32
    %c0_i32_1 = arith.constant 0 : i32
    return %c0_i32, %c0_i32_0 : i32, i32
  }
  func.func @transform_4(%arg0: i32) -> (i32, i32) {
    %c0_i32 = arith.constant 0 : i32
    %c0_i32_0 = arith.constant 0 : i32
    %c0_i32_1 = arith.constant 0 : i32
    return %c0_i32, %c0_i32_0 : i32, i32
  }
  func.func @transform_5(%arg0: i32) -> (i32, i32) {
    %c0_i32 = arith.constant 0 : i32
    %c0_i32_0 = arith.constant 0 : i32
    %c0_i32_1 = arith.constant 0 : i32
    return %c0_i32, %c0_i32_0 : i32, i32
  }
  func.func @transform_6(%arg0: i32) -> (i32, i32) {
    %c0_i32 = arith.constant 0 : i32
    %c0_i32_0 = arith.constant 0 : i32
    %c0_i32_1 = arith.constant 0 : i32
    return %c0_i32, %c0_i32_0 : i32, i32
  }
  func.func @transform_7(%arg0: i32) -> (i32, i32) {
    %c0_i32 = arith.constant 0 : i32
    %c0_i32_0 = arith.constant 0 : i32
    return %arg0, %c0_i32 : i32, i32
  }
}

</mosaic_0001>

<bundles_post_ra>
// kernel: tpu_custom_call.1
= control target key start
LH: loop header
LB: loop body
LE: loop exit
PB: predicated region body
PF: predicated region fallthrough
CT: control target
= control target key end

     0   :  { %12 = vsyncpa [#allocation6], 0  ;;  %s1954_s0 = inlined_call_operand.hbm [shape: f32[64,256], index: 0, kind: input, shape index: {}]   ;;  %s1955_s1 = inlined_call_operand.vmem [shape: f32[8,32], index: 1, kind: input, shape index: {}]   ;;  %s1956_s2 = inlined_call_operand.vmem [shape: f32[8,1], index: 2, kind: input, shape index: {}]   ;;  %s1957_s3 = inlined_call_operand.vmem [shape: f32[8,72], index: 3, kind: input, shape index: {}]   ;;  %s1958_s4 = inlined_call_operand.vmem [shape: f32[8,1], index: 4, kind: input, shape index: {}]   ;;  %s1959_s5 = inlined_call_operand.vmem [shape: f32[32,8], index: 5, kind: input, shape index: {}]   ;;  %s1960_s6 = inlined_call_operand.vmem [shape: f32[32,1], index: 6, kind: input, shape index: {}]   ;;  %s1961_s7 = inlined_call_operand.hbm [shape: f32[64,256], index: 7, kind: output, shape index: {}]  }
   0x1   :  { %14 = vsyncpa [#allocation6 + $0x1], 0 }
   0x2   :  { %15 = vsyncpa [#allocation7], 0 }
   0x3   :  { %17 = vsyncpa [#allocation7 + $0x1], 0  ;;  %s1653_s24 = smov 0   ;;  %s1655_s25 = smov 0  }
   0x4   :  { %s1657_s26 = smov 0   ;;  %s1659_s27 = smov 0  }
   0x5 LB: > { %s1674_s28 = sadd.s32 4294967295, %s1563_s27   ;;  %s1207_s29 = sadd.s32 4294967294, %s1563_s27   ;;  %s1563_s27 = sphi %s1659_s27, %s1974_s27   ;;  %s1559_s26 = sphi %s1657_s26, %s1973_s26   ;;  %s1555_s25 = sphi %s1655_s25, %s1972_s25   ;;  %s1551_s24 = sphi %s1653_s24, %s1971_s24  }
   0x6   : > { %s1678_s30 = sadd.s32 1, %s1563_s27   ;;  %s30_s8 = sadd.s32 1, %s1559_s26 }
   0x7   : > { %s27_s9 = ssub.s32 %s1563_s27, %s1678_s30  ;;  %p37_p0 = scmp.ne.s32.totalorder %s1559_s26, %s1555_s25 }
   0x8   : > { %p28_p1 = scmp.eq.s32.totalorder %s27_s9, 0  ;;  %p38_p2 = scmp.eq.s32.totalorder %s1563_s27, 0 }
   0x9   : > { %p43_p3 = scmp.ne.s32.totalorder %s1555_s25, %s1551_s24  ;;  %p44_p4 = scmp.eq.s32.totalorder %s1674_s28, 0 }
   0xa   : > { %s1690_s10 = scalar_select %p28_p1, %s1559_s26, %s30_s8  }
   0xb   : > { %p1692_p5 = por %p38_p2, %p37_p0  ;;  %p1696_p6 = por %p44_p4, %p43_p3 }
   0xc   : > { %p193_p7 = scmp.eq.s32.totalorder %s1674_s28, 1  ;;  %p199_p8 = scmp.eq.s32.totalorder %s1207_s29, 1 }
   0xd   : > { %p1315_p10 = scmp.lt.s32.totalorder %s1563_s27, 2  ;;  %s237_s15 = sand.u32 1, %s1559_s26  }
   0xe   : > { %p1703_p11 = por %p193_p7, %p37_p0  ;;  %p1707_p12 = por %p199_p8, %p43_p3 }
   0xf   : > { %s1231_s16 = sshll.u32 %s1563_s27, 10  ;;  %s1210_s17 = sshll.u32 %s237_s15, 6 }
  0x10   : > { %s1965_s13 = scalar_select %p1703_p11, 1, 0 }
  0x11   : > { %s1966_s14 = scalar_select %p1707_p12, 1, 0 }
  0x12   : > { %s1716_s20 = scalar_lea.hbm %s1954_s0, %s1231_s16  ;;  %s241_s21 = scalar_lea.vmem [#allocation5], %s1210_s17 }
  0x13   : > { %s249_s22 = sshll.u32 %s241_s21, 4  ;;  %p1720_p13 = pnand %p1315_p10, %p1692_p5  ;;  %s1724_s22 = int_to_ptr.vmem [resolvable:$true] %s249_s22 }
  0x14   : > { %s1726_s29 = scalar_lea.sflag [#allocation6], %s237_s15  ;;  %s1467_s8 = scalar_lea.hbm %s1716_s20, 1024 }
  0x15   : > { %p1468_p0 = scmp.ne.s32.totalorder %s1716_s20, %s1467_s8  ;;  %p1469_p1 = pneg %p1720_p13 }
  0x16   : > { %s1472_s16 = scalar_lea.hbm %s1954_s0, 2048  ;;  %p1473_p4 = scmp.lt.u32.totalorder %s1716_s20, %s1954_s0 }
  0x17   : > { %p1470_p2 = pnand %p1469_p1, %p1468_p0  ;;  %p1474_p5 = scmp.lt.u32.totalorder %s1472_s16, %s1467_s8 }
  0x18   : > { %p1476_p8 = scmp.lt.u32.totalorder %s1467_s8, %s1716_s20 }
  0x19   : > { %p1471_p3 = pneg %p1470_p2  ;;  %p1475_p7 = por %p1474_p5, %p1473_p4 }
  0x1b   : > { %p1477_p10 = por %p1476_p8, %p1475_p7 }
  0x1d   : > { %p1478_p9 = pnand %p1477_p10, %p1471_p3 }
  0x1f   : > { %1481 = shalt.err (!%p1478_p9)
}
  0x20   : > { %s1482_s15 = scalar_lea.vmem %s1724_s22, 1024  ;;  %s1565_s19 = smov [#allocation5]  }
  0x21   : > { %p1483_p0 = scmp.ne.s32.totalorder %s1724_s22, %s1482_s15  ;;  %s1487_s21 = sshll.u32 %s1565_s19, 4  ;;  %s1488_s21 = int_to_ptr.vmem [resolvable:$false] %s1487_s21 }
  0x22   : > { %s1489_s9 = scalar_lea.vmem %s1488_s21, 2048  ;;  %p1490_p11 = scmp.lt.s32.totalorder %s1724_s22, %s1488_s21 }
  0x23   : > { %p1485_p2 = pnand %p1483_p0, %p1469_p1  ;;  %p1491_p4 = scmp.lt.s32.totalorder %s1489_s9, %s1482_s15 }
  0x25   : > { %p1486_p12 = pneg %p1485_p2  ;;  %p1492_p5 = por %p1491_p4, %p1490_p11 }
  0x27   : > { %p1493_p7 = pnand %p1492_p5, %p1486_p12 }
  0x29   : > { %1496 = shalt.err (!%p1493_p7)
}
  0x2a   : > { %s1566_s8 = smov 256   ;;  %s1567_s11 = smov 16  }
  0x2b   : > { %1310 = dma.hbm_to_vmem [thread:$0]  (!%p1720_p13), %s1716_s20, 1024, %s1724_s22, %s1726_s29, %s1566_s8, %s1566_s8, %s1567_s11  }
  0x2c   : > { %p1214_p9 = scmp.ge.s32.totalorder %s1563_s27, 1  ;;  %p257_p1 = scmp.lt.s32.totalorder %s1563_s27, 3 }
  0x2e   : > { %p258_p3 = pnand %p1214_p9, %p257_p1 }
  0x2f   : > { %s1757_s16 = sand.u32 (!%p258_p3), 1, %s1555_s25  }
  0x30   : > { %261 = sbr.rel (%p258_p3) target bundleno = 1210 (0x4ba), region = 48  ;;  %s1215_s17 = sshll.u32 (!%p258_p3), %s1757_s16, 6 }
  0x31   : > { %s264_s18 = scalar_lea.sflag (!%p258_p3), [#allocation6], %s1757_s16  ;;  %s267_s15 = scalar_lea.vmem (!%p258_p3), [#allocation5], %s1215_s17 }
  0x37   : > { %1542 = dma.done.wait (%p1696_p6), %s264_s18, 1024  }
  0x38   : > { %1544 = vsyncadd (%p1696_p6), %s264_s18, 4294966272  ;;  %v1568_v0 = vmov 0.0   ;;  %v1569_v1 = vmov 0   ;;  %v1772_v2 = vld [vmem:[%s267_s15 + $0x8] sm:$0xff]  ;;  %v1774_v3 = vld [vmem:[%s267_s15 + $0x18] sm:$0xff]  ;;  %vm315_vm0 = vcmask 261120  }
  0x39   : > { %383 = vmatprep.mubr.f32.mxu0 %v1568_v0  ;;  %393 = vst [vmem:[#allocation2 + $0x8] sm:$0xff] %v1568_v0  ;;  %394 = vst [vmem:[#allocation2 + $0x10] sm:$0xff] %v1568_v0  ;;  %1395 = vset.pattern.permute.xlu0 %v1569_v1  ;;  %v1776_v4 = vld [vmem:[%s267_s15] sm:$0xff]  ;;  %v1265_v5 = vpack.c.bf16 %v1774_v3, %v1772_v2  ;;  %v1780_v6 = vld [vmem:[%s267_s15 + $0x10] sm:$0xff]  ;;  %s1570_s29 = smov 19   ;;  %s1571_s19 = smov 31  }
  0x3a   : > { %395 = vst [vmem:[#allocation2 + $0x18] sm:$0xff] %v1568_v0  ;;  %793 = vmatprep.mubr.f32.mxu1 %v1568_v0  ;;  %1466 = vset.pattern.permute.xlu1 %v1569_v1  ;;  %v1782_v7 = vld [vmem:[%s267_s15 + $0x28] sm:$0xff]  ;;  %v1784_v8 = vld [vmem:[%s267_s15 + $0x38] sm:$0xff]  ;;  %v1267_v9 = vpack.c.bf16 %v1780_v6, %v1776_v4  ;;  %v1790_v11 = vld [vmem:[%s267_s15 + $0x20] sm:$0xff]  ;;  %s1572_s21 = smov 33   ;;  %s1573_s9 = smov 21  }
  0x3b   : > { %v1269_v10 = vpack.c.bf16 %v1784_v8, %v1782_v7  ;;  %v1792_v12 = vld [vmem:[%s267_s15 + $0x30] sm:$0xff]  ;;  %1266 = vmatprep.subr.bf16.mxu0 %v1265_v5  ;;  %v309_v13 = vld [vmem:[%s1956_s2] sm:$0xff]  ;;  %s1574_s8 = smov 35   ;;  %s1575_s11 = smov 23   ;;  %vm401_vm1 = vcmask 285848   ;;  %vm433_vm2 = vcmask 121856  }
  0x3c   : > { %1268 = vmatpush1.bf16.msra.mxu0 %v1267_v9  ;;  %v1271_v14 = vpack.c.bf16 %v1792_v12, %v1790_v11  ;;  %312 = vperm.xlu0 %1395, %v309_v13   ;;  %v308_v15 = vld [vmem:[%s1955_s1] sm:$0xff]  ;;  %s1576_s18 = smov 37   ;;  %s1577_s15 = smov 25   ;;  %vm438_vm3 = vcmask 269448   ;;  %vm406_vm4 = vcmask 433448   ;;  %vm444_vm5 = vcmask 417048  }
  0x3d   : > { %1270 = vmatprep.subr.bf16.mxu0 %v1269_v10  ;;  %s1578_s12 = smov 39   ;;  %s1579_s20 = smov 27   ;;  %vm411_vm6 = vcmask 581048   ;;  %vm449_vm7 = vcmask 564648   ;;  %vm416_vm8 = vcmask 728648   ;;  %vm454_vm9 = vcmask 712248  }
  0x3e   : > { %s1580_s22 = smov 41   ;;  %s1581_s23 = smov 29   ;;  %vm421_vm10 = vcmask 876248   ;;  %vm459_vm11 = vcmask 859848   ;;  %vm426_vm12 = vcmask 1023848   ;;  %vm431_vm13 = vcmask 1048568  }
  0x3f   : > { %vm464_vm14 = vcmask 1007448   ;;  %vm471_vm15 = vcmask 105472   ;;  %v1586_v41 = vmov 0.0|0.0   ;;  %p1968_p11 = scmp.ne.s32.totalorder %s1965_s13, 0 }
  0x40   : > { %1272 = vmatpush1.bf16.msra.mxu0 %v1271_v14 }
  0x41   : > { %1289 = vmatprep.subr.bf16.mxu0 %v1586_v41 }
  0x43   : > { %1217 = vmatmul.mubr.msk.f32.vlgmr.msra.gmra.mrb[0].mxu0 %vm315_vm0, %v308_v15  ;;  %vm469_vm0 = vcmask 1048552  }
  0xbb   : > { %v313_v16 = vpop.permute.xlu0 %312 }
 0x116   : > { %v385_v17 = vpop.f32.mrb[0].mxu0 }
 0x117   : > { %v386_v18 = vadd.f32 %v385_v17, %v313_v16  ;;  %v387_v19 = vpop.f32.mrb[1].mxu0 }
 0x118   : > { %v388_v21 = vadd.f32 %v387_v19, %v313_v16 }
 0x119   : > { %v390_v20 = vmax.f32 %v386_v18, 0.0 }
 0x11a   : > { %v391_v22 = vmax.f32 %v388_v21, 0.0 }
 0x11b   : > { %398 = vrot.lane.b32.xlu1 %v390_v20, %s1570_s29  ;;  %428 = vrot.lane.b32.xlu0 %v390_v20, %s1571_s19  ;;  %s1582_s19 = smov 43  }
 0x11f   : > { %435 = vrot.lane.b32.xlu1 %v390_v20, %s1572_s21  ;;  %403 = vrot.lane.b32.xlu0 %v390_v20, %s1573_s9  ;;  %s1583_s21 = smov 45   ;;  %s1584_s9 = smov 47  }
 0x123   : > { %441 = vrot.lane.b32.xlu1 %v391_v22, %s1574_s8  ;;  %408 = vrot.lane.b32.xlu0 %v390_v20, %s1575_s11  ;;  %s1585_s8 = smov 49   ;;  %s1587_s11 = smov 18  }
 0x127   : > { %446 = vrot.lane.b32.xlu1 %v391_v22, %s1576_s18  ;;  %413 = vrot.lane.b32.xlu0 %v390_v20, %s1577_s15  ;;  %s1588_s18 = smov 1   ;;  %s1589_s15 = smov 17  }
 0x12b   : > { %451 = vrot.lane.b32.xlu1 %v391_v22, %s1578_s12  ;;  %418 = vrot.lane.b32.xlu0 %v390_v20, %s1579_s20  ;;  %s1590_s12 = smov 127   ;;  %s1591_s20 = smov 111  }
 0x12f   : > { %456 = vrot.lane.b32.xlu1 %v391_v22, %s1580_s22  ;;  %423 = vrot.lane.b32.xlu0 %v390_v20, %s1581_s23  ;;  %s1592_s22 = smov 110   ;;  %s1604_s23 = smov 101  }
 0x133   : > { %461 = vrot.lane.b32.xlu1 %v391_v22, %s1582_s19  ;;  %466 = vrot.lane.b32.xlu0 %v391_v22, %s1583_s21  ;;  %s1595_s21 = smov 81   ;;  %s1605_s19 = smov 89  }
 0x137   : > { %473 = vrot.lane.b32.xlu1 %v391_v22, %s1584_s9  ;;  %478 = vrot.lane.b32.xlu0 %v391_v22, %s1585_s8  ;;  %s1596_s9 = smov 83   ;;  %s1597_s8 = smov 79  }
 0x18d   : > { %v399_v23 = vpop.permute.xlu1 %398  ;;  %v429_v24 = vpop.permute.xlu0 %428 }
 0x18e   : > { %402 = vst.msk [vmem:[#allocation2 + $0x8] sm:$0xff] %vm401_vm1, %v399_v23  ;;  %vm476_vm1 = vcmask 253048  }
 0x18f   : > { %434 = vst.msk [vmem:[#allocation2 + $0x10] sm:$0xff] %vm433_vm2, %v429_v24  ;;  %vm481_vm2 = vcmask 400648  }
 0x191   : > { %v436_v25 = vpop.permute.xlu1 %435  ;;  %v404_v26 = vpop.permute.xlu0 %403 }
 0x192   : > { %439 = vst.msk [vmem:[#allocation2 + $0x10] sm:$0xff] %vm438_vm3, %v436_v25  ;;  %vm1593_vm3 = vmmov 0  }
 0x193   : > { %407 = vst.msk [vmem:[#allocation2 + $0x8] sm:$0xff] %vm406_vm4, %v404_v26  ;;  %1262 = vmatprep.mubr.msk.f32.mxu0 %vm1593_vm3, %v1568_v0  ;;  %vm577_vm4 = vcmask 7168   ;;  %vm941_vm3 = vcmask 678912  }
 0x195   : > { %v442_v27 = vpop.permute.xlu1 %441  ;;  %v409_v28 = vpop.permute.xlu0 %408 }
 0x196   : > { %445 = vst.msk [vmem:[#allocation2 + $0x10] sm:$0xff] %vm444_vm5, %v442_v27  ;;  %vm499_vm5 = vcmask 154624  }
 0x197   : > { %412 = vst.msk [vmem:[#allocation2 + $0x8] sm:$0xff] %vm411_vm6, %v409_v28  ;;  %vm551_vm6 = vcmask 138240  }
 0x199   : > { %v447_v29 = vpop.permute.xlu1 %446  ;;  %v414_v30 = vpop.permute.xlu0 %413 }
 0x19a   : > { %450 = vst.msk [vmem:[#allocation2 + $0x10] sm:$0xff] %vm449_vm7, %v447_v29  ;;  %vm525_vm7 = vcmask 146432  }
 0x19b   : > { %417 = vst.msk [vmem:[#allocation2 + $0x8] sm:$0xff] %vm416_vm8, %v414_v30  ;;  %vm609_vm8 = vcmask 1039360  }
 0x19d   : > { %v452_v31 = vpop.permute.xlu1 %451  ;;  %v419_v32 = vpop.permute.xlu0 %418 }
 0x19e   : > { %455 = vst.msk [vmem:[#allocation2 + $0x10] sm:$0xff] %vm454_vm9, %v452_v31  ;;  %vm661_vm9 = vcmask 900096  }
 0x19f   : > { %422 = vst.msk [vmem:[#allocation2 + $0x8] sm:$0xff] %vm421_vm10, %v419_v32  ;;  %vm635_vm10 = vcmask 908288  }
 0x1a1   : > { %v457_v33 = vpop.permute.xlu1 %456  ;;  %v424_v34 = vpop.permute.xlu0 %423 }
 0x1a2   : > { %460 = vst.msk [vmem:[#allocation2 + $0x10] sm:$0xff] %vm459_vm11, %v457_v33  ;;  %vm687_vm11 = vcmask 891904  }
 0x1a3   : > { %427 = vst.msk [vmem:[#allocation2 + $0x8] sm:$0xff] %vm426_vm12, %v424_v34  ;;  %vm725_vm12 = vcmask 588800  }
 0x1a4   : > { %432 = vst.msk [vmem:[#allocation2 + $0x8] sm:$0xff] %vm431_vm13, %v429_v24  ;;  %vm874_vm13 = vcmask 130048  }
 0x1a5   : > { %v462_v35 = vpop.permute.xlu1 %461  ;;  %v467_v36 = vpop.permute.xlu0 %466 }
 0x1a6   : > { %465 = vst.msk [vmem:[#allocation2 + $0x10] sm:$0xff] %vm464_vm14, %v462_v35  ;;  %vm879_vm14 = vcmask 261248  }
 0x1a7   : > { %472 = vst.msk [vmem:[#allocation2 + $0x18] sm:$0xff] %vm471_vm15, %v467_v36  ;;  %vm884_vm15 = vcmask 392448  }
 0x1a8   : > { %470 = vst.msk [vmem:[#allocation2 + $0x10] sm:$0xff] %vm469_vm0, %v467_v36  ;;  %vm889_vm0 = vcmask 523648  }
 0x1a9   : > { %v474_v37 = vpop.permute.xlu1 %473  ;;  %v479_v38 = vpop.permute.xlu0 %478 }
 0x1aa   : > { %477 = vst.msk [vmem:[#allocation2 + $0x18] sm:$0xff] %vm476_vm1, %v474_v37  ;;  %vm894_vm1 = vcmask 654848  }
 0x1ab   : > { %482 = vst.msk [vmem:[#allocation2 + $0x18] sm:$0xff] %vm481_vm2, %v479_v38  ;;  %v1811_v43 = vld [vmem:[#allocation2 + $0x8] sm:$0xff]  ;;  %vm899_vm2 = vcmask 786048  }
 0x1ac   : > { %v1436_v45 = vpack.i.bf16 %v1568_v0, %v1811_v43 }
 0x1af   : > { %v1809_v42 = vld [vmem:[#allocation2 + $0x10] sm:$0xff] }
 0x1b0   : > { %v1421_v44 = vpack.i.bf16 %v1809_v42, %v1811_v43 }
 0x1b2   : > { %v1803_v39 = vld [vmem:[#allocation2 + $0x18] sm:$0xff] }
 0x1b3   : > { %v1401_v40 = vpack.i.bf16 %v1803_v39, %v1568_v0  ;;  %v1456_v46 = vpack.i.bf16 %v1803_v39, %v1809_v42 }
 0x1b5   : > { %1402 = vrot.lane.b32.xlu0 %v1401_v40, %s1587_s11  ;;  %1397 = vrot.lane.b32.xlu1 %v1401_v40, %s1570_s29 }
 0x1b9   : > { %1412 = vrot.lane.b32.xlu0 %v1401_v40, %s1588_s18  ;;  %1407 = vrot.lane.b32.xlu1 %v1401_v40, %s1589_s15 }
 0x1bd   : > { %1422 = vrot.lane.b32.xlu0 %v1421_v44, %s1587_s11  ;;  %1417 = vrot.lane.b32.xlu1 %v1421_v44, %s1570_s29  ;;  %s1594_s29 = smov 109   ;;  %s1598_s11 = smov 99  }
 0x1c1   : > { %1432 = vrot.lane.b32.xlu0 %v1421_v44, %s1588_s18  ;;  %1427 = vrot.lane.b32.xlu1 %v1421_v44, %s1589_s15  ;;  %s1599_s18 = smov 107   ;;  %s1600_s15 = smov 105  }
 0x1c5   : > { %1437 = vrot.lane.b32.xlu0 %v1436_v45, %s1590_s12  ;;  %1442 = vrot.lane.b32.xlu1 %v1436_v45, %s1591_s20 }
 0x1c9   : > { %1457 = vrot.lane.b32.xlu0 %v1456_v46, %s1592_s22  ;;  %1447 = vrot.lane.b32.xlu1 %v1456_v46, %s1590_s12  ;;  %s1601_s12 = smov 93  }
 0x1cd   : > { %1462 = vrot.lane.b32.xlu0 %v1436_v45, %s1592_s22  ;;  %1452 = vrot.lane.b32.xlu1 %v1456_v46, %s1591_s20  ;;  %s1602_s20 = smov 103   ;;  %s1603_s22 = smov 91  }
 0x1d1   : > { %683 = vrot.lane.b32.xlu0 %v1803_v39, %s1594_s29  ;;  %681 = vrot.lane.b32.xlu1 %v1809_v42, %s1594_s29 }
 0x1d5   : > { %685 = vrot.lane.b32.xlu0 %v1568_v0, %s1594_s29  ;;  %679 = vrot.lane.b32.xlu1 %v1811_v43, %s1594_s29 }
 0x227   : > { %v1403_v47 = vpop.permute.xlu0 %1402  ;;  %v1398_v48 = vpop.permute.xlu1 %1397 }
 0x228   : > { %v1405_v51 = vunpack.i.h.bf16 %v1403_v47  ;;  %v1400_v52 = vunpack.i.h.bf16 %v1398_v48  ;;  %v1404_v59 = vunpack.i.l.bf16 %v1403_v47  ;;  %v1399_v60 = vunpack.i.l.bf16 %v1398_v48 }
 0x22b   : > { %v1413_v49 = vpop.permute.xlu0 %1412  ;;  %v1408_v50 = vpop.permute.xlu1 %1407 }
 0x22c   : > { %v1415_v61 = vunpack.i.h.bf16 %v1413_v49  ;;  %v1410_v62 = vunpack.i.h.bf16 %v1408_v50  ;;  %v1414_v22 = vunpack.i.l.bf16 %v1413_v49  ;;  %v1409_v23 = vunpack.i.l.bf16 %v1408_v50 }
 0x22f   : > { %v1423_v53 = vpop.permute.xlu0 %1422  ;;  %v1418_v54 = vpop.permute.xlu1 %1417 }
 0x230   : > { %v1425_v55 = vunpack.i.h.bf16 %v1423_v53  ;;  %v1424_v56 = vunpack.i.l.bf16 %v1423_v53  ;;  %v1420_v57 = vunpack.i.h.bf16 %v1418_v54  ;;  %v1419_v58 = vunpack.i.l.bf16 %v1418_v54 }
 0x232   : > { %v501_v63 = vsel %vm499_vm5, %v1419_v58, %v1420_v57  ;;  %v502_v1 = vsel %vm499_vm5, %v1420_v57, %v1400_v52  ;;  %v527_v5 = vsel %vm525_vm7, %v1424_v56, %v1425_v55  ;;  %v528_v9 = vsel %vm525_vm7, %v1425_v55, %v1405_v51 }
 0x233   : > { %v1433_v10 = vpop.permute.xlu0 %1432  ;;  %v1428_v13 = vpop.permute.xlu1 %1427  ;;  %v1273_v14 = vpack.c.bf16 %v527_v5, %v501_v63  ;;  %v1290_v15 = vpack.c.bf16 %v528_v9, %v502_v1  ;;  %v500_v16 = vsel %vm499_vm5, %v1399_v60, %v1419_v58  ;;  %v526_v17 = vsel %vm525_vm7, %v1404_v59, %v1424_v56 }
 0x234   : > { %v1435_v18 = vunpack.i.h.bf16 %v1433_v10  ;;  %v1434_v19 = vunpack.i.l.bf16 %v1433_v10  ;;  %v1430_v20 = vunpack.i.h.bf16 %v1428_v13  ;;  %v1429_v21 = vunpack.i.l.bf16 %v1428_v13 }
 0x235   : > { %1274 = vmatprep.subr.bf16.mxu1 %v1273_v14  ;;  %1291 = vmatpush3.bf16.msra.mxu0 %v1290_v15  ;;  %v1275_v24 = vpack.c.bf16 %v526_v17, %v500_v16  ;;  %v697_v17 = vld [vmem:[%s1957_s3] sm:$0xff]  ;;  %vm914_vm5 = vcmask 1048448   ;;  %vm993_vm7 = vcmask 64512  }
 0x236   : > { %v580_v25 = vsel %vm577_vm4, %v1435_v18, %v1415_v61  ;;  %v554_v26 = vsel %vm551_vm6, %v1430_v20, %v1410_v62  ;;  %1292 = vmatprep.subr.bf16.mxu0 %v1586_v41  ;;  %v553_v27 = vsel %vm551_vm6, %v1429_v21, %v1430_v20  ;;  %v579_v28 = vsel %vm577_vm4, %v1434_v19, %v1435_v18 }
 0x237   : > { %v1293_v29 = vpack.c.bf16 %v580_v25, %v554_v26  ;;  %1276 = vmatpush1.bf16.msra.mxu1 %v1275_v24  ;;  %v1438_v30 = vpop.permute.xlu0 %1437  ;;  %v1443_v31 = vpop.permute.xlu1 %1442  ;;  %v1277_v32 = vpack.c.bf16 %v579_v28, %v553_v27  ;;  %v552_v33 = vsel %vm551_vm6, %v1409_v23, %v1429_v21  ;;  %v578_v34 = vsel %vm577_vm4, %v1414_v22, %v1434_v19  ;;  %v969_v24 = vld [vmem:[%s1960_s6] sm:$0xff]  ;;  %v971_v26 = vld [vmem:[%s1960_s6 + $0x10] sm:$0xff]  ;;  %v970_v27 = vld [vmem:[%s1960_s6 + $0x8] sm:$0xff] }
 0x238   : > { %v1279_v35 = vpack.c.bf16 %v578_v34, %v552_v33  ;;  %v1440_v38 = vunpack.i.h.bf16 %v1438_v30  ;;  %v1439_v40 = vunpack.i.l.bf16 %v1438_v30  ;;  %v1445_v51 = vunpack.i.h.bf16 %v1443_v31  ;;  %v955_v25 = vld [vmem:[%s1958_s4] sm:$0xff]  ;;  %v972_v28 = vld [vmem:[%s1960_s6 + $0x18] sm:$0xff] }
 0x239   : > { %1278 = vmatprep.subr.bf16.mxu1 %v1277_v32  ;;  %1294 = vmatpush3.bf16.msra.mxu0 %v1293_v29  ;;  %v1444_v61 = vunpack.i.l.bf16 %v1443_v31  ;;  %vm909_vm4 = vcmask 917248   ;;  %vm906_vm6 = vcmask 793600  }
 0x23a   : > { %1295 = vmatprep.subr.bf16.mxu0 %v1586_v41 }
 0x23b   : > { %1280 = vmatpush1.bf16.msra.mxu1 %v1279_v35  ;;  %v1458_v36 = vpop.permute.xlu0 %1457  ;;  %v1448_v37 = vpop.permute.xlu1 %1447 }
 0x23c   : > { %v1450_v44 = vunpack.i.h.bf16 %v1448_v37  ;;  %v1449_v45 = vunpack.i.l.bf16 %v1448_v37  ;;  %v1460_v46 = vunpack.i.h.bf16 %v1458_v36  ;;  %v1459_v47 = vunpack.i.l.bf16 %v1458_v36 }
 0x23e   : > { %v612_v48 = vsel %vm609_vm8, %v1450_v44, %v1440_v38  ;;  %v611_v49 = vsel %vm609_vm8, %v1449_v45, %v1450_v44  ;;  %v610_v50 = vsel %vm609_vm8, %v1439_v40, %v1449_v45  ;;  %v663_v62 = vsel %vm661_vm9, %v1459_v47, %v1460_v46 }
 0x23f   : > { %v1296_v52 = vpack.c.bf16 %v612_v48, %v1803_v39  ;;  %v1463_v53 = vpop.permute.xlu0 %1462  ;;  %v1453_v54 = vpop.permute.xlu1 %1452  ;;  %v1281_v55 = vpack.c.bf16 %v611_v49, %v1809_v42  ;;  %v1283_v56 = vpack.c.bf16 %v610_v50, %v1811_v43 }
 0x240   : > { %v1465_v57 = vunpack.i.h.bf16 %v1463_v53  ;;  %v1464_v58 = vunpack.i.l.bf16 %v1463_v53  ;;  %v1455_v59 = vunpack.i.h.bf16 %v1453_v54  ;;  %v1454_v60 = vunpack.i.l.bf16 %v1453_v54 }
 0x241   : > { %1282 = vmatprep.subr.bf16.mxu1 %v1281_v55  ;;  %1297 = vmatpush3.bf16.msra.mxu0 %v1296_v52 }
 0x242   : > { %v664_v63 = vsel %vm661_vm9, %v1460_v46, %v1465_v57  ;;  %v638_v1 = vsel %vm635_vm10, %v1455_v59, %v1445_v51  ;;  %1284 = vmatpush1.bf16.msra.mxu1 %v1283_v56  ;;  %1298 = vmatprep.subr.bf16.mxu0 %v1586_v41  ;;  %v637_v39 = vsel %vm635_vm10, %v1454_v60, %v1455_v59 }
 0x243   : > { %v1299_v42 = vpack.c.bf16 %v664_v63, %v638_v1  ;;  %v684_v43 = vpop.permute.xlu0 %683  ;;  %v682_v5 = vpop.permute.xlu1 %681  ;;  %v1285_v9 = vpack.c.bf16 %v663_v62, %v637_v39  ;;  %v636_v10 = vsel %vm635_vm10, %v1444_v61, %v1454_v60  ;;  %v662_v13 = vsel %vm661_vm9, %v1464_v58, %v1459_v47  ;;  %v965_v60 = vld [vmem:[%s1959_s5] sm:$0xff]  ;;  %v966_v61 = vld [vmem:[%s1959_s5 + $0x8] sm:$0xff]  ;;  %v967_v62 = vld [vmem:[%s1959_s5 + $0x10] sm:$0xff] }
 0x244   : > { %v1287_v14 = vpack.c.bf16 %v662_v13, %v636_v10  ;;  %v689_v15 = vsel %vm687_vm11, %v682_v5, %v684_v43  ;;  %v968_v63 = vld [vmem:[%s1959_s5 + $0x18] sm:$0xff] }
 0x245   : > { %1286 = vmatprep.subr.bf16.mxu1 %v1285_v9  ;;  %1300 = vmatpush3.bf16.msra.mxu0 %v1299_v42 }
 0x246   : > { %1288 = vmatpush1.bf16.msra.mxu1 %v1287_v14  ;;  %1260 = vmatprep.subr.mxu0 %v1568_v0 }
 0x247   : > { %v686_v41 = vpop.permute.xlu0 %685  ;;  %v680_v16 = vpop.permute.xlu1 %679  ;;  %745 = vmatprep.subr.mxu1 %v689_v15 }
 0x248   : > { %v690_v18 = vsel %vm687_vm11, %v684_v43, %v686_v41  ;;  %v688_v19 = vsel %vm687_vm11, %v680_v16, %v682_v5 }
 0x249   : > { %1261 = vmatpush3.msra.mxu0 %v690_v18 }
 0x24a   : > { %746 = vmatpush1.msra.mxu1 %v688_v19  ;;  %1263 = vmatmul.mubr.msk.f32.vlgmr.msra.gmra.mrb[2].mxu0 %vm725_vm12, %v697_v17 }
 0x24b   : > { %1218 = vmatmul.mubr.msk.f32.vlgmr.msra.gmra.mrb[0].mxu1 %vm725_vm12, %v697_v17  ;;  %1070 = vmatprep.mubr.f32.mxu0 %v1568_v0 }
 0x24c   : > { %1076 = vmatprep.mubr.f32.mxu1 %v1568_v0 }
 0x31d   : > { %v866_v20 = vpop.f32.mrb[2].mxu0 }
 0x31e   : > { %945 = vrot.lane.b32.xlu0 %v866_v20, %s1595_s21  ;;  %939 = vrot.lane.b32.xlu1 %v866_v20, %s1596_s9  ;;  %v1264_v21 = vpop.f32.mrb[3].mxu0  ;;  %v795_v22 = vpop.f32.mrb[0].mxu1  ;;  %s1606_s21 = smov 97  }
 0x31f   : > { %v797_v23 = vpop.f32.mrb[1].mxu1 }
 0x322   : > { %949 = vrot.lane.b32.xlu1 %v866_v20, %s1597_s8  ;;  %871 = vrot.lane.b32.xlu0 %v795_v22, %s1594_s29  ;;  %s1607_s8 = smov 87   ;;  %s1608_s29 = smov 85  }
 0x326   : > { %896 = vrot.lane.b32.xlu1 %v795_v22, %s1598_s11  ;;  %876 = vrot.lane.b32.xlu0 %v795_v22, %s1599_s18  ;;  %s1609_s11 = smov 95   ;;  %s1610_s18 = smov [#allocation8]  }
 0x32a   : > { %881 = vrot.lane.b32.xlu0 %v795_v22, %s1600_s15  ;;  %916 = vrot.lane.b32.xlu1 %v797_v23, %s1601_s12  ;;  %s1501_s15 = sshll.u32 %s1610_s18, 4  ;;  %s1502_s15 = int_to_ptr.vmem [resolvable:$false] %s1501_s15 }
 0x32b   : > { %s1503_s12 = scalar_lea.vmem %s1502_s15, 2048 }
 0x32e   : > { %886 = vrot.lane.b32.xlu0 %v795_v22, %s1602_s20  ;;  %920 = vrot.lane.b32.xlu1 %v797_v23, %s1603_s22 }
 0x332   : > { %891 = vrot.lane.b32.xlu0 %v795_v22, %s1604_s23  ;;  %924 = vrot.lane.b32.xlu1 %v797_v23, %s1605_s19 }
 0x336   : > { %902 = vrot.lane.b32.xlu0 %v795_v22, %s1606_s21  ;;  %928 = vrot.lane.b32.xlu1 %v797_v23, %s1607_s8 }
 0x33a   : > { %937 = vrot.lane.b32.xlu0 %v797_v23, %s1596_s9  ;;  %932 = vrot.lane.b32.xlu1 %v797_v23, %s1608_s29  ;;  %s297_s9 = scalar_lea.vmem [#allocation8], %s1215_s17 }
 0x33b   : > { %s1134_s19 = sshll.u32 %s297_s9, 4  ;;  %s1904_s19 = int_to_ptr.vmem [resolvable:$true] %s1134_s19 }
 0x33c   : > { %p1504_p8 = scmp.lt.s32.totalorder %s1904_s19, %s1502_s15 }
 0x33e   : > { %911 = vrot.lane.b32.xlu0 %v797_v23, %s1609_s11  ;;  %904 = vrot.lane.b32.xlu1 %v797_v23, %s1606_s21  ;;  %s1233_s21 = sshll.u32 %s1674_s28, 10  ;;  %s1120_s28 = scalar_lea.sflag [#allocation7], %s1757_s16 }
 0x33f   : > { %s1910_s29 = scalar_lea.hbm %s1961_s7, %s1233_s21  ;;  %s1497_s11 = scalar_lea.vmem %s1904_s19, 1024 }
 0x340   : > { %p1498_p6 = scmp.ne.s32.totalorder %s1904_s19, %s1497_s11  ;;  %p1505_p10 = scmp.lt.s32.totalorder %s1503_s12, %s1497_s11 }
 0x342   : > { %975 = vperm.xlu0 %1395, %v969_v24   ;;  %958 = vperm.xlu1 %1466, %v955_v25   ;;  %p1499_p12 = pnand %p1498_p6, %p1968_p11  ;;  %p1506_p0 = por %p1505_p10, %p1504_p8 }
 0x344   : > { %p1500_p13 = pneg %p1499_p12 }
 0x346   : > { %985 = vperm.xlu0 %1395, %v971_v26   ;;  %980 = vperm.xlu1 %1466, %v970_v27   ;;  %p1507_p2 = pnand %p1506_p0, %p1500_p13 }
 0x34a   : > { %990 = vperm.xlu1 %1466, %v972_v28  }
 0x390   : > { %v946_v29 = vpop.permute.xlu0 %945  ;;  %v940_v30 = vpop.permute.xlu1 %939 }
 0x394   : > { %v950_v31 = vpop.permute.xlu1 %949  ;;  %v872_v32 = vpop.permute.xlu0 %871 }
 0x395   : > { %875 = vst.msk [vmem:[#allocation4] sm:$0xff] %vm874_vm13, %v872_v32 }
 0x398   : > { %v897_v33 = vpop.permute.xlu1 %896  ;;  %v877_v34 = vpop.permute.xlu0 %876 }
 0x399   : > { %880 = vst.msk [vmem:[#allocation4] sm:$0xff] %vm879_vm14, %v877_v34 }
 0x39c   : > { %v882_v35 = vpop.permute.xlu0 %881  ;;  %v917_v36 = vpop.permute.xlu1 %916 }
 0x39d   : > { %885 = vst.msk [vmem:[#allocation4] sm:$0xff] %vm884_vm15, %v882_v35 }
 0x39e   : > { %919 = vst.msk [vmem:[#allocation4 + $0x8] sm:$0xff] %vm874_vm13, %v917_v36 }
 0x3a0   : > { %v887_v37 = vpop.permute.xlu0 %886  ;;  %v921_v38 = vpop.permute.xlu1 %920 }
 0x3a1   : > { %890 = vst.msk [vmem:[#allocation4] sm:$0xff] %vm889_vm0, %v887_v37 }
 0x3a2   : > { %923 = vst.msk [vmem:[#allocation4 + $0x8] sm:$0xff] %vm879_vm14, %v921_v38 }
 0x3a4   : > { %v892_v40 = vpop.permute.xlu0 %891  ;;  %v925_v44 = vpop.permute.xlu1 %924 }
 0x3a5   : > { %895 = vst.msk [vmem:[#allocation4] sm:$0xff] %vm894_vm1, %v892_v40 }
 0x3a6   : > { %927 = vst.msk [vmem:[#allocation4 + $0x8] sm:$0xff] %vm884_vm15, %v925_v44 }
 0x3a7   : > { %900 = vst.msk [vmem:[#allocation4] sm:$0xff] %vm899_vm2, %v897_v33 }
 0x3a8   : > { %v903_v45 = vpop.permute.xlu0 %902  ;;  %v929_v46 = vpop.permute.xlu1 %928 }
 0x3a9   : > { %931 = vst.msk [vmem:[#allocation4 + $0x8] sm:$0xff] %vm889_vm0, %v929_v46 }
 0x3ac   : > { %v938_v47 = vpop.permute.xlu0 %937  ;;  %v933_v48 = vpop.permute.xlu1 %932 }
 0x3ad   : > { %v942_v49 = vsel %vm941_vm3, %v938_v47, %v940_v30  ;;  %935 = vst.msk [vmem:[#allocation4 + $0x8] sm:$0xff] %vm894_vm1, %v933_v48 }
 0x3ae   : > { %944 = vst.msk [vmem:[#allocation4 + $0x8] sm:$0xff] %vm899_vm2, %v942_v49 }
 0x3af   : > { %948 = vst.msk [vmem:[#allocation4 + $0x8] sm:$0xff] %vm909_vm4, %v946_v29 }
 0x3b0   : > { %952 = vst.msk [vmem:[#allocation4 + $0x8] sm:$0xff] %vm914_vm5, %v950_v31  ;;  %v905_v50 = vpop.permute.xlu1 %904  ;;  %v912_v52 = vpop.permute.xlu0 %911 }
 0x3b1   : > { %v907_v51 = vsel %vm906_vm6, %v903_v45, %v905_v50 }
 0x3b2   : > { %910 = vst.msk [vmem:[#allocation4] sm:$0xff] %vm909_vm4, %v907_v51 }
 0x3b3   : > { %915 = vst.msk [vmem:[#allocation4] sm:$0xff] %vm914_vm5, %v912_v52 }
 0x3b7   : > { %v954_v54 = vld [vmem:[#allocation4 + $0x8] sm:$0xff] }
 0x3ba   : > { %v953_v53 = vld [vmem:[#allocation4] sm:$0xff] }
 0x3c1   : > { %v959_v55 = vpop.permute.xlu1 %958  ;;  %v976_v1 = vpop.permute.xlu0 %975 }
 0x3c2   : > { %v961_v56 = vadd.f32 %v959_v55, %v953_v53  ;;  %v962_v57 = vadd.f32 %v959_v55, %v954_v54 }
 0x3c4   : > { %v963_v58 = vmax.f32 %v961_v56, 0.0  ;;  %v964_v59 = vmax.f32 %v962_v57, 0.0 }
 0x3c5   : > { %v981_v39 = vpop.permute.xlu1 %980  ;;  %v986_v16 = vpop.permute.xlu0 %985 }
 0x3c6   : > { %1006 = vmatprep.subr.mxu0 %v964_v59  ;;  %1301 = vmatprep.subr.mxu1 %v964_v59 }
 0x3c7   : > { %1007 = vmatpush1.msra.mxu0 %v963_v58  ;;  %1302 = vmatpush1.msra.mxu1 %v963_v58 }
 0x3c8   : > { %1220 = vmatmul.mubr.msk.f32.vlgmr.msra.gmra.mrb[4].mxu0 %vm993_vm7, %v965_v60  ;;  %1221 = vmatmul.mubr.msk.f32.vlgmr.msra.gmra.mrb[2].mxu1 %vm993_vm7, %v966_v61 }
 0x3c9   : > { %1082 = vmatprep.mubr.f32.mxu1 %v1568_v0 }
 0x3cc   : > { %1222 = vmatmul.mubr.msk.f32.gmra.mrb[4].mxu1 %vm993_vm7, %v967_v62 }
 0x3cd   : > { %1088 = vmatprep.mubr.f32.mxu1 %v1568_v0 }
 0x3d0   : > { %1223 = vmatmul.mubr.msk.f32.gmra.mrb[6].mxu1 %vm993_vm7, %v968_v63 }
 0x49b   : > { %v1072_v42 = vpop.f32.mrb[4].mxu0  ;;  %v1078_v43 = vpop.f32.mrb[2].mxu1 }
 0x49c   : > { %v1073_v5 = vadd.f32 %v1072_v42, %v976_v1  ;;  %v1079_v9 = vadd.f32 %v1078_v43, %v981_v39  ;;  %v1074_v10 = vpop.f32.mrb[5].mxu0  ;;  %v1080_v13 = vpop.f32.mrb[3].mxu1 }
 0x49d   : > { %v1075_v14 = vadd.f32 %v1074_v10, %v976_v1  ;;  %v1081_v15 = vadd.f32 %v1080_v13, %v981_v39 }
 0x49e   : > { %v1095_v41 = vadd.f32 %v1073_v5, %v1776_v4  ;;  %v1097_v0 = vadd.f32 %v1079_v9, %v1780_v6  ;;  %v991_v6 = vpop.permute.xlu1 %990 }
 0x49f   : > { %v1096_v17 = vadd.f32 %v1075_v14, %v1772_v2  ;;  %v1098_v18 = vadd.f32 %v1081_v15, %v1774_v3  ;;  %v1084_v19 = vpop.f32.mrb[4].mxu1 }
 0x4a0   : > { %v1103_v20 = vmax.f32 %v1095_v41, 0.0  ;;  %v1105_v21 = vmax.f32 %v1097_v0, 0.0  ;;  %v1085_v22 = vadd.f32 %v1084_v19, %v986_v16  ;;  %v1086_v23 = vpop.f32.mrb[5].mxu1 }
 0x4a1   : > { %v1104_v24 = vmax.f32 %v1096_v17, 0.0  ;;  %v1106_v25 = vmax.f32 %v1098_v18, 0.0  ;;  %v1087_v26 = vadd.f32 %v1086_v23, %v986_v16 }
 0x4a2   : > { %1111 = vst [vmem:[%s297_s9] sm:$0xff] %v1103_v20  ;;  %1113 = vst [vmem:[%s297_s9 + $0x10] sm:$0xff] %v1105_v21  ;;  %v1099_v4 = vadd.f32 %v1085_v22, %v1790_v11 }
 0x4a3   : > { %1112 = vst [vmem:[%s297_s9 + $0x8] sm:$0xff] %v1104_v24  ;;  %1114 = vst [vmem:[%s297_s9 + $0x18] sm:$0xff] %v1106_v25  ;;  %v1100_v2 = vadd.f32 %v1087_v26, %v1782_v7  ;;  %v1090_v3 = vpop.f32.mrb[6].mxu1 }
 0x4a4   : > { %v1107_v27 = vmax.f32 %v1099_v4, 0.0  ;;  %v1091_v28 = vadd.f32 %v1090_v3, %v991_v6  ;;  %v1092_v29 = vpop.f32.mrb[7].mxu1 }
 0x4a5   : > { %v1108_v30 = vmax.f32 %v1100_v2, 0.0  ;;  %v1093_v31 = vadd.f32 %v1092_v29, %v991_v6 }
 0x4a6   : > { %1115 = vst [vmem:[%s297_s9 + $0x20] sm:$0xff] %v1107_v27  ;;  %v1101_v32 = vadd.f32 %v1091_v28, %v1792_v12 }
 0x4a7   : > { %1116 = vst [vmem:[%s297_s9 + $0x28] sm:$0xff] %v1108_v30  ;;  %v1102_v7 = vadd.f32 %v1093_v31, %v1784_v8 }
 0x4a8   : > { %v1109_v11 = vmax.f32 %v1101_v32, 0.0 }
 0x4a9   : > { %v1110_v33 = vmax.f32 %v1102_v7, 0.0 }
 0x4aa   : > { %1117 = vst [vmem:[%s297_s9 + $0x30] sm:$0xff] %v1109_v11 }
 0x4ab   : > { %1118 = vst [vmem:[%s297_s9 + $0x38] sm:$0xff] %v1110_v33 }
 0x4ac   : > { %1510 = shalt.err (!%p1507_p2)
}
 0x4ad   : > { %s1511_s20 = scalar_lea.hbm %s1910_s29, 1024  ;;  %s1515_s9 = scalar_lea.hbm %s1961_s7, 2048 }
 0x4ae   : > { %p1512_p4 = scmp.ne.s32.totalorder %s1910_s29, %s1511_s20  ;;  %p1516_p9 = scmp.lt.u32.totalorder %s1910_s29, %s1961_s7 }
 0x4af   : > { %p1517_p1 = scmp.lt.u32.totalorder %s1515_s9, %s1511_s20  ;;  %p1519_p6 = scmp.lt.u32.totalorder %s1511_s20, %s1910_s29 }
 0x4b0   : > { %p1513_p5 = pnand %p1512_p4, %p1968_p11 }
 0x4b1   : > { %p1518_p3 = por %p1517_p1, %p1516_p9 }
 0x4b2   : > { %p1514_p7 = pneg %p1513_p5 }
 0x4b3   : > { %p1520_p12 = por %p1519_p6, %p1518_p3 }
 0x4b5   : > { %p1521_p13 = pnand %p1520_p12, %p1514_p7 }
 0x4b7   : > { %1524 = shalt.err (!%p1521_p13)
}
 0x4b8   : > { %s1611_s8 = smov 256   ;;  %s1612_s11 = smov 16  }
 0x4b9   : > { %1305 = dma.vmem_to_hbm [thread:$0]  (%p1968_p11), %s1904_s19, 1024, %s1910_s29, %s1120_s28, %s1611_s8, %s1611_s8, %s1612_s11  }
 0x4ba PF: > { %s1149_s18 = sand.u32 1, %s1551_s24   ;;  %p1969_p8 = scmp.ne.s32.totalorder %s1966_s14, 0 }
 0x4bb   : > { %p1970_p10 = scmp.ge.s32.totalorder %s1563_s27, 2  ;;  %s1150_s15 = scalar_lea.sflag [#allocation7], %s1149_s18 }
 0x4bd   : > { %p1312_p0 = pnand %p1970_p10, %p1969_p8 }
 0x4bf   : > { %1546 = dma.done.wait (!%p1312_p0), %s1150_s15, 1024  }
 0x4c0   : > { %1548 = vsyncadd (!%p1312_p0), %s1150_s15, 4294966272  ;;  %p20_p2 = scmp.ge.s32.totalorder %s1678_s30, 4   ;;  %s1971_s24 = smov %s1555_s25 }
 0x4c1   : > { %s1972_s25 = smov %s1559_s26  ;;  %s1973_s26 = smov %s1690_s10 }
 0x4c2   : > { %s1974_s27 = smov %s1678_s30  ;;  %22 = sbr.rel (!%p20_p2) target bundleno = 5 (0x5), region = 93 }
 0x4c9   :  { %1155 = vsyncpa [#allocation6], 1 }
 0x4ca   :  { %1157 = vsyncpa [#allocation6 + $0x1], 1 }
 0x4cb   :  { %1158 = vsyncpa [#allocation7], 1 }
 0x4cc   :  { %1160 = vsyncpa [#allocation7 + $0x1], 1 }

</bundles_post_ra>
